<compile_context>
chip_gen: v7x
topology: tpu7x:2x2x1
jax: 0.10.0
libtpu: 0.0.40
codegen_flags: <defaults>
</compile_context>

<pallas_src>
import functools

import jax
import jax.numpy as jnp
from jax import lax
from jax.experimental import pallas as pl
from jax.experimental.pallas import tpu as pltpu


def _mse_objective_kernel(set_ref, target_ref, w_ref, b_ref, sq_ref, acc_ref,
                          *, total_b, total_n):
    # set_ref:    (TB*C, TN)  current tile of set_t flattened over (B, C)
    # target_ref: (TB, D)
    # w_ref:      (C, D)
    # b_ref:      (1, D)
    # sq_ref:     (1, TB, D)  per-B-tile squared errors (output)
    # acc_ref:    (TB*C, 1)   f32 running sum over the set axis
    i = pl.program_id(0)          # B-tile index ("parallel")
    j = pl.program_id(1)          # N-tile index (reduction, innermost)
    nn = pl.num_programs(1)

    tbc, tn = set_ref.shape
    tb, d = target_ref.shape
    c = w_ref.shape[0]

    @pl.when(j == 0)
    def _init():
        acc_ref[...] = jnp.zeros_like(acc_ref)

    def _accumulate(mask_tail):
        x = set_ref[...].astype(jnp.float32)                  # (TB*C, TN)
        if mask_tail:
            lane = lax.broadcasted_iota(jnp.int32, (tbc, tn), 1)
            x = jnp.where(lane + j * tn < total_n, x, 0.0)
        # Immediate per-tile reduce along N into a tiny (TB*C, 1) accumulator:
        # no full-tile store traffic; the cross-lane reduce is free filler.
        acc_ref[...] += jnp.sum(x, axis=-1, keepdims=True)

    if total_n % tn == 0:
        _accumulate(False)                                    # no tail ever
    else:
        @pl.when(j < nn - 1)
        def _steady():                                        # unmasked hot loop
            _accumulate(False)

        @pl.when(j == nn - 1)
        def _tail():                                          # masked last N tile
            _accumulate(True)

    @pl.when(j == nn - 1)
    def _finalize():
        # sum_n (x[b,:,n] @ W + b) == (sum_n x[b,:,n]) @ W + N*b
        wf = w_ref[...].astype(jnp.float32)                   # (C, D)
        bias = float(total_n) * b_ref[...].astype(jnp.float32)  # (1, D)
        pred = jnp.zeros((tb, d), jnp.float32) + bias         # (TB, D)
        # pooled[b, c] lives at acc_ref[b*C + c, 0]; read each channel as a
        # stride-C sublane column (cold path, once per B tile) and contract on
        # the VPU -- C is tiny for this encoder, so MXU fill/drain isn't worth
        # it.  TODO(synk): for C >> 8, assemble pooled as (TB, C) and jnp.dot.
        for cc in range(c):
            if c == 1:
                col = acc_ref[...]                            # (TB, 1)
            else:
                col = acc_ref[pl.ds(cc, tb, stride=c), :]     # (TB, 1)
            pred = pred + col * wf[cc:cc + 1, :]
        diff = pred - target_ref[...].astype(jnp.float32)     # (TB, D)
        if total_b % tb != 0:
            # Mask padded rows of the last (partial) B tile.
            row = lax.broadcasted_iota(jnp.int32, (tb, d), 0)
            diff = jnp.where(row + i * tb < total_b, diff, 0.0)
        sq_ref[0] = diff * diff


def _default_budget():
    """Per-generation (block bytes, vmem limit bytes, split batch tiles).

    v7x: 64 MiB VMEM/TC and 2 TCs/chip -> smaller blocks, scoped limit ~48 MiB,
    and split the batch axis so the "parallel" grid axis uses both cores.
    v5e/v6e: 128 MiB VMEM, single TC -> fatter blocks / higher limit.  The
    kernel is pure HBM roofline; 4-8 MiB blocks already sit at ~85%+ of it."""
    try:
        kind = jax.devices()[0].device_kind.lower()
    except Exception:
        kind = ""
    if "v7" in kind:
        return 4 * 1024 * 1024, 48 * 1024 * 1024, True
    return 8 * 1024 * 1024, 80 * 1024 * 1024, False


def _choose_tiles(B, C, N, itemsize, max_block_bytes, split_b):
    """Pick (TB, TN) for blocks of the (B*C, N)-flattened set tensor.

    Constraints: TB*C divisible by 8 or TB == B (this also keeps the (TB, D)
    target block legal: TB multiple of 8 or TB == B); TN divisible by 128 or
    TN == N.  TN is maximized first (long contiguous DMA rows), then TB from
    the remaining byte budget."""
    max_elems = max(max_block_bytes // max(itemsize, 1), 8 * 128)

    row_min = B * C if B <= 8 else 8 * C
    lane_budget = max(1, max_elems // row_min)
    if N <= lane_budget:
        tn = N
    else:
        tn = max(128, (lane_budget // 128) * 128)

    if B <= 8:
        tb = B
    else:
        tb = min(B, max(8, max_elems // (C * tn)))
        if split_b and B >= 16:
            tb = min(tb, max(8, (B // 2) // 8 * 8))   # guarantee >= 2 B tiles
        if tb < B:
            tb = max(8, (tb // 8) * 8)
    return tb, tn


def mse_objective(set_t, target_repr, w, b, *, max_block_bytes=None,
                  vmem_limit_bytes=None, split_batch_tiles=None):
    B, C, N = set_t.shape
    Bt, D = target_repr.shape
    assert B == Bt and w.shape == (C, D) and b.shape == (1, D)

    dev_block, dev_limit, dev_split = _default_budget()
    if max_block_bytes is None:
        max_block_bytes = dev_block
    if vmem_limit_bytes is None:
        vmem_limit_bytes = dev_limit
    if split_batch_tiles is None:
        split_batch_tiles = dev_split

    # Free reshape (contiguous): no extra HBM pass, fixes C<8 sublane padding.
    set_flat = set_t.reshape(B * C, N)
    itemsize = jnp.dtype(set_t.dtype).itemsize
    TB, TN = _choose_tiles(B, C, N, itemsize, max_block_bytes, split_batch_tiles)
    nb = pl.cdiv(B, TB)
    nn = pl.cdiv(N, TN)

    kernel = functools.partial(_mse_objective_kernel, total_b=B, total_n=N)

    sq = pl.pallas_call(
        kernel,
        out_shape=jax.ShapeDtypeStruct((nb, TB, D), jnp.float32),
        grid_spec=pltpu.PrefetchScalarGridSpec(
            num_scalar_prefetch=0,
            grid=(nb, nn),
            in_specs=[
                pl.BlockSpec((TB * C, TN), lambda i, j: (i, j)),
                pl.BlockSpec((TB, D), lambda i, j: (i, 0)),
                pl.BlockSpec((C, D), lambda i, j: (0, 0)),
                pl.BlockSpec((1, D), lambda i, j: (0, 0)),
            ],
            out_specs=pl.BlockSpec((1, TB, D), lambda i, j: (i, 0, 0)),
            scratch_shapes=[pltpu.VMEM((TB * C, 1), jnp.float32)],
        ),
        compiler_params=pltpu.CompilerParams(
            dimension_semantics=("parallel", "arbitrary"),
            vmem_limit_bytes=vmem_limit_bytes,
        ),
    )(set_flat, target_repr, w, b)

    # mse_loss(...,'none').sum(dim=0).mean() * 0.5 == 0.5 * sum(diff^2) / D
    return 0.5 * jnp.sum(sq) / D


def mse_objective_ref(set_t, target_repr, w, b):
    """Plain-JAX reference mirroring the PyTorch semantics."""
    x = set_t.astype(jnp.float32)
    pooled = jnp.sum(x, axis=-1)
    pred = pooled @ w.astype(jnp.float32) + set_t.shape[-1] * b.astype(jnp.float32)[0]
    diff = pred - target_repr.astype(jnp.float32)
    return 0.5 * jnp.mean(jnp.sum(diff * diff, axis=0))


if __name__ == "__main__":
    key = jax.random.PRNGKey(0)
    k1, k2, k3, k4 = jax.random.split(key, 4)

    # 1) Small shapes consistent with the set-encoder interface.
    B, C, N, D = 2, 4, 8, 32
    set_t = jax.random.normal(k1, (B, C, N), dtype=jnp.float32)
    target_repr = jax.random.normal(k2, (B, D), dtype=jnp.float32)
    w = jax.random.normal(k3, (C, D), dtype=jnp.float32) * 0.1
    b = jax.random.normal(k4, (1, D), dtype=jnp.float32) * 0.1

    loss = jax.block_until_ready(mse_objective(set_t, target_repr, w, b))
    ref = mse_objective_ref(set_t, target_repr, w, b)
    assert jnp.allclose(loss, ref, rtol=1e-5, atol=1e-5), (loss, ref)

    # 2) Exercise the v7x-style batch split (>=2 B tiles, "parallel" axis) and
    #    the masked partial last B tile.
    B2, C2, N2, D2 = 20, 4, 300, 32
    k5, k6, k7, k8 = jax.random.split(jax.random.PRNGKey(1), 4)
    set2 = jax.random.normal(k5, (B2, C2, N2), dtype=jnp.float32)
    tgt2 = jax.random.normal(k6, (B2, D2), dtype=jnp.float32)
    w2 = jax.random.normal(k7, (C2, D2), dtype=jnp.float32) * 0.1
    b2 = jax.random.normal(k8, (1, D2), dtype=jnp.float32) * 0.1
    loss2 = jax.block_until_ready(
        mse_objective(set2, tgt2, w2, b2, split_batch_tiles=True))
    ref2 = mse_objective_ref(set2, tgt2, w2, b2)
    assert jnp.allclose(loss2, ref2, rtol=1e-4, atol=1e-4), (loss2, ref2)

    # 3) bf16 streamed input + forced tiny block budget: exercises the N-tiled
    #    pipeline, the pl.when-gated N-tail mask, and the B-tail mask.
    set3 = set2.astype(jnp.bfloat16)
    loss3 = jax.block_until_ready(
        mse_objective(set3, tgt2, w2, b2,
                      max_block_bytes=16 * 1024, split_batch_tiles=False))
    ref3 = mse_objective_ref(set3, tgt2, w2, b2)
    assert jnp.allclose(loss3, ref3, rtol=2e-4, atol=1e-3), (loss3, ref3)

    print("KERNEL_OK")
</pallas_src>

<mosaic_0001>
module attributes {stable_mosaic.version = 11 : i64} {
  func.func @_mse_objective_kernel(%arg0: i32, %arg1: i32, %arg2: memref<8x8xf32, #tpu.memory_space<vmem>>, %arg3: memref<2x32xf32, #tpu.memory_space<vmem>>, %arg4: memref<4x32xf32, #tpu.memory_space<vmem>>, %arg5: memref<1x32xf32, #tpu.memory_space<vmem>>, %arg6: memref<1x2x32xf32, #tpu.memory_space<vmem>>, %arg7: memref<8x1xf32, #tpu.memory_space<vmem>>) attributes {dimension_semantics = [#tpu.dimension_semantics<parallel>, #tpu.dimension_semantics<arbitrary>], iteration_bounds = array<i64: 1, 1>, scalar_prefetch = 0 : i64, scratch_operands = 1 : i64, tpu.core_type = #tpu.core_type<tc>, window_params = [{transform_indices = @transform_0, window_bounds = array<i64: 8, 8>}, {transform_indices = @transform_1, window_bounds = array<i64: 2, 32>}, {pipeline_mode = #tpu.pipeline_mode<synchronous>, transform_indices = @transform_2, window_bounds = array<i64: 4, 32>}, {pipeline_mode = #tpu.pipeline_mode<synchronous>, transform_indices = @transform_3, window_bounds = array<i64: 1, 32>}, {transform_indices = @transform_4, window_bounds = array<i64: 1, 2, 32>}]} {
    %c0_i32 = arith.constant 0 : i32
    %0 = arith.cmpi eq, %arg1, %c0_i32 : i32
    %1 = arith.extui %0 : i1 to i32
    %c0_i32_0 = arith.constant 0 : i32
    %2 = arith.cmpi ne, %1, %c0_i32_0 : i32
    scf.if %2 {
      %cst_8 = arith.constant 0.000000e+00 : f32
      %12 = vector.broadcast %cst_8 : f32 to vector<8x1xf32>
      %c0_9 = arith.constant 0 : index
      %c0_10 = arith.constant 0 : index
      %13 = vector.load %arg7[%c0_9, %c0_10] : memref<8x1xf32, #tpu.memory_space<vmem>>, vector<8x1xf32>
      tpu.vector_store %arg7[%c0_9, %c0_10], %12 {strides = array<i32>} : memref<8x1xf32, #tpu.memory_space<vmem>>, vector<8x1xf32>,
    } else {
    }
    %c0 = arith.constant 0 : index
    %c0_1 = arith.constant 0 : index
    %3 = vector.load %arg2[%c0, %c0_1] : memref<8x8xf32, #tpu.memory_space<vmem>>, vector<8x8xf32>
    %c0_2 = arith.constant 0 : index
    %c0_3 = arith.constant 0 : index
    %4 = vector.load %arg7[%c0_2, %c0_3] : memref<8x1xf32, #tpu.memory_space<vmem>>, vector<8x1xf32>
    %cst = arith.constant dense<0.000000e+00> : vector<8xf32>
    %5 = vector.multi_reduction <add>, %3, %cst [1] : vector<8x8xf32> to vector<8xf32>
    %6 = vector.shape_cast %5 : vector<8xf32> to vector<8x1xf32>
    %7 = arith.addf %4, %6 : vector<8x1xf32>
    %c0_4 = arith.constant 0 : index
    %c0_5 = arith.constant 0 : index
    %8 = vector.load %arg7[%c0_4, %c0_5] : memref<8x1xf32, #tpu.memory_space<vmem>>, vector<8x1xf32>
    tpu.vector_store %arg7[%c0_4, %c0_5], %7 {strides = array<i32>} : memref<8x1xf32, #tpu.memory_space<vmem>>, vector<8x1xf32>,
    %c0_i32_6 = arith.constant 0 : i32
    %9 = arith.cmpi eq, %arg1, %c0_i32_6 : i32
    %10 = arith.extui %9 : i1 to i32
    %c0_i32_7 = arith.constant 0 : i32
    %11 = arith.cmpi ne, %10, %c0_i32_7 : i32
    scf.if %11 {
      %c0_8 = arith.constant 0 : index
      %c0_9 = arith.constant 0 : index
      %12 = vector.load %arg4[%c0_8, %c0_9] : memref<4x32xf32, #tpu.memory_space<vmem>>, vector<4x32xf32>
      %c0_10 = arith.constant 0 : index
      %c0_11 = arith.constant 0 : index
      %13 = vector.load %arg5[%c0_10, %c0_11] : memref<1x32xf32, #tpu.memory_space<vmem>>, vector<1x32xf32>
      %cst_12 = arith.constant 8.000000e+00 : f32
      %14 = vector.broadcast %cst_12 : f32 to vector<1x32xf32>
      %15 = arith.mulf %14, %13 : vector<1x32xf32>
      %cst_13 = arith.constant 0.000000e+00 : f32
      %16 = vector.broadcast %cst_13 : f32 to vector<2x32xf32>
      %17 = vector.broadcast %15 : vector<1x32xf32> to vector<2x32xf32>
      %18 = arith.addf %16, %17 : vector<2x32xf32>
      %c0_14 = arith.constant 0 : index
      %c0_15 = arith.constant 0 : index
      %19 = tpu.strided_load %arg7[%c0_14, %c0_15] {strides = array<i32: 4, 1>} : memref<8x1xf32, #tpu.memory_space<vmem>>, vector<2x1xf32>
      %20 = vector.extract_strided_slice %12 {offsets = [0, 0], sizes = [1, 32], strides = [1, 1]} : vector<4x32xf32> to vector<1x32xf32>
      %21 = vector.broadcast %19 : vector<2x1xf32> to vector<2x32xf32>
      %22 = vector.broadcast %20 : vector<1x32xf32> to vector<2x32xf32>
      %23 = arith.mulf %21, %22 : vector<2x32xf32>
      %24 = arith.addf %18, %23 : vector<2x32xf32>
      %c1 = arith.constant 1 : index
      %c0_16 = arith.constant 0 : index
      %25 = tpu.strided_load %arg7[%c1, %c0_16] {strides = array<i32: 4, 1>} : memref<8x1xf32, #tpu.memory_space<vmem>>, vector<2x1xf32>
      %26 = vector.extract_strided_slice %12 {offsets = [1, 0], sizes = [1, 32], strides = [1, 1]} : vector<4x32xf32> to vector<1x32xf32>
      %27 = vector.broadcast %25 : vector<2x1xf32> to vector<2x32xf32>
      %28 = vector.broadcast %26 : vector<1x32xf32> to vector<2x32xf32>
      %29 = arith.mulf %27, %28 : vector<2x32xf32>
      %30 = arith.addf %24, %29 : vector<2x32xf32>
      %c2 = arith.constant 2 : index
      %c0_17 = arith.constant 0 : index
      %31 = tpu.strided_load %arg7[%c2, %c0_17] {strides = array<i32: 4, 1>} : memref<8x1xf32, #tpu.memory_space<vmem>>, vector<2x1xf32>
      %32 = vector.extract_strided_slice %12 {offsets = [2, 0], sizes = [1, 32], strides = [1, 1]} : vector<4x32xf32> to vector<1x32xf32>
      %33 = vector.broadcast %31 : vector<2x1xf32> to vector<2x32xf32>
      %34 = vector.broadcast %32 : vector<1x32xf32> to vector<2x32xf32>
      %35 = arith.mulf %33, %34 : vector<2x32xf32>
      %36 = arith.addf %30, %35 : vector<2x32xf32>
      %c3 = arith.constant 3 : index
      %c0_18 = arith.constant 0 : index
      %37 = tpu.strided_load %arg7[%c3, %c0_18] {strides = array<i32: 4, 1>} : memref<8x1xf32, #tpu.memory_space<vmem>>, vector<2x1xf32>
      %38 = vector.extract_strided_slice %12 {offsets = [3, 0], sizes = [1, 32], strides = [1, 1]} : vector<4x32xf32> to vector<1x32xf32>
      %39 = vector.broadcast %37 : vector<2x1xf32> to vector<2x32xf32>
      %40 = vector.broadcast %38 : vector<1x32xf32> to vector<2x32xf32>
      %41 = arith.mulf %39, %40 : vector<2x32xf32>
      %42 = arith.addf %36, %41 : vector<2x32xf32>
      %c0_19 = arith.constant 0 : index
      %c0_20 = arith.constant 0 : index
      %43 = vector.load %arg3[%c0_19, %c0_20] : memref<2x32xf32, #tpu.memory_space<vmem>>, vector<2x32xf32>
      %44 = arith.subf %42, %43 : vector<2x32xf32>
      %45 = arith.mulf %44, %44 : vector<2x32xf32>
      %c0_21 = arith.constant 0 : index
      %c0_22 = arith.constant 0 : index
      %c0_23 = arith.constant 0 : index
      %46 = vector.load %arg6[%c0_21, %c0_22, %c0_23] : memref<1x2x32xf32, #tpu.memory_space<vmem>>, vector<1x2x32xf32>
      %47 = vector.shape_cast %46 : vector<1x2x32xf32> to vector<2x32xf32>
      %48 = vector.shape_cast %45 : vector<2x32xf32> to vector<1x2x32xf32>
      tpu.vector_store %arg6[%c0_21, %c0_22, %c0_23], %48 {strides = array<i32>} : memref<1x2x32xf32, #tpu.memory_space<vmem>>, vector<1x2x32xf32>,
    } else {
    }
    return
  }
  func.func @transform_0(%arg0: i32, %arg1: i32) -> (i32, i32) {
    %c0_i32 = arith.constant 0 : i32
    return %arg0, %arg1 : i32, i32
  }
  func.func @transform_1(%arg0: i32, %arg1: i32) -> (i32, i32) {
    %c0_i32 = arith.constant 0 : i32
    %c0_i32_0 = arith.constant 0 : i32
    return %arg0, %c0_i32 : i32, i32
  }
  func.func @transform_2(%arg0: i32, %arg1: i32) -> (i32, i32) {
    %c0_i32 = arith.constant 0 : i32
    %c0_i32_0 = arith.constant 0 : i32
    %c0_i32_1 = arith.constant 0 : i32
    return %c0_i32, %c0_i32_0 : i32, i32
  }
  func.func @transform_3(%arg0: i32, %arg1: i32) -> (i32, i32) {
    %c0_i32 = arith.constant 0 : i32
    %c0_i32_0 = arith.constant 0 : i32
    %c0_i32_1 = arith.constant 0 : i32
    return %c0_i32, %c0_i32_0 : i32, i32
  }
  func.func @transform_4(%arg0: i32, %arg1: i32) -> (i32, i32, i32) {
    %c0_i32 = arith.constant 0 : i32
    %c0_i32_0 = arith.constant 0 : i32
    %c0_i32_1 = arith.constant 0 : i32
    return %arg0, %c0_i32, %c0_i32_0 : i32, i32, i32
  }
}

</mosaic_0001>

<bundles_post_ra>
// kernel: tpu_custom_call.1
= control target key start
LH: loop header
LB: loop body
LE: loop exit
PB: predicated region body
PF: predicated region fallthrough
CT: control target
= control target key end

     0   :  { %9 = vsyncpa [#allocation4], 0  ;;  %s385_s0 = inlined_call_operand.hbm [shape: f32[8,8], index: 0, kind: input, shape index: {}]   ;;  %s386_s1 = inlined_call_operand.hbm [shape: f32[2,32], index: 1, kind: input, shape index: {}]   ;;  %s387_s2 = inlined_call_operand.hbm [shape: f32[4,32], index: 2, kind: input, shape index: {}]   ;;  %s388_s3 = inlined_call_operand.hbm [shape: f32[1,32], index: 3, kind: input, shape index: {}]   ;;  %s389_s4 = inlined_call_operand.hbm [shape: f32[1,2,32], index: 4, kind: output, shape index: {}]  }
   0x1   :  { %10 = vsyncpa [#allocation7], 0 }
   0x2   :  { %11 = vsyncpa [#allocation10], 0 }
   0x3   :  { %12 = vsyncpa [#allocation5], 0  ;;  %s293_s15 = smov [#allocation6]   ;;  %s294_s17 = smov [#allocation3]  }
   0x4   :  { %s29_s16 = sshll.u32 %s293_s15, 4  ;;  %s19_s18 = sshll.u32 %s294_s17, 4  ;;  %s30_s16 = int_to_ptr.vmem [resolvable:$true] %s29_s16  ;;  %s20_s18 = int_to_ptr.vmem [resolvable:$true] %s19_s18 }
   0x5   :  { %s175_s21 = scalar_lea.hbm %s386_s1, 32 }
   0x6   :  { %p176_p0 = scmp.ne.s32.totalorder %s386_s1, %s175_s21  ;;  %p179_p1 = scmp.lt.u32.totalorder %s175_s21, %s386_s1 }
   0x8   :  { %p181_p2 = pnand %p179_p1, %p176_p0 }
   0xa   :  { %184 = shalt.err (!%p181_p2)
}
   0xb   :  { %s185_s26 = scalar_lea.vmem %s30_s16, 32  ;;  %p190_p4 = scmp.lt.s32.totalorder %s30_s16, %s30_s16 }
   0xc   :  { %p186_p3 = scmp.ne.s32.totalorder %s30_s16, %s185_s26  ;;  %p191_p5 = scmp.lt.s32.totalorder %s185_s26, %s185_s26 }
   0xe   :  { %p192_p6 = por %p191_p5, %p190_p4 }
  0x10   :  { %p193_p7 = pnand %p192_p6, %p186_p3 }
  0x12   :  { %196 = shalt.err (!%p193_p7)
}
  0x13   :  { %32 = dma.hbm_to_vmem [thread:$0]  %s386_s1, 32, %s30_s16, [#allocation7]  }
  0x14   :  { %s197_s5 = scalar_lea.hbm %s385_s0, 128 }
  0x15   :  { %p198_p8 = scmp.ne.s32.totalorder %s385_s0, %s197_s5  ;;  %p201_p9 = scmp.lt.u32.totalorder %s197_s5, %s385_s0 }
  0x17   :  { %p203_p10 = pnand %p201_p9, %p198_p8 }
  0x19   :  { %206 = shalt.err (!%p203_p10)
}
  0x1a   :  { %s207_s10 = scalar_lea.vmem %s20_s18, 128  ;;  %p212_p12 = scmp.lt.s32.totalorder %s20_s18, %s20_s18 }
  0x1b   :  { %p208_p11 = scmp.ne.s32.totalorder %s20_s18, %s207_s10  ;;  %p213_p13 = scmp.lt.s32.totalorder %s207_s10, %s207_s10 }
  0x1d   :  { %p214_p0 = por %p213_p13, %p212_p12 }
  0x1f   :  { %p215_p1 = pnand %p214_p0, %p208_p11 }
  0x21   :  { %218 = shalt.err (!%p215_p1)
}
  0x22   :  { %22 = dma.hbm_to_vmem [thread:$0]  %s385_s0, 128, %s20_s18, [#allocation4]  }
  0x23   :  { %s295_s12 = smov [#allocation8]   ;;  %s296_s14 = smov [#allocation9]  }
  0x24   :  { %s39_s13 = sshll.u32 %s295_s12, 4  ;;  %s49_s15 = sshll.u32 %s296_s14, 4  ;;  %s40_s13 = int_to_ptr.vmem [resolvable:$true] %s39_s13  ;;  %s50_s15 = int_to_ptr.vmem [resolvable:$true] %s49_s15 }
  0x25   :  { %s219_s19 = scalar_lea.hbm %s387_s2, 64 }
  0x26   :  { %p220_p2 = scmp.ne.s32.totalorder %s387_s2, %s219_s19  ;;  %p223_p3 = scmp.lt.u32.totalorder %s219_s19, %s387_s2 }
  0x28   :  { %p225_p4 = pnand %p223_p3, %p220_p2 }
  0x2a   :  { %228 = shalt.err (!%p225_p4)
}
  0x2b   :  { %s229_s0 = scalar_lea.vmem %s40_s13, 64  ;;  %p234_p6 = scmp.lt.s32.totalorder %s40_s13, %s40_s13 }
  0x2c   :  { %p230_p5 = scmp.ne.s32.totalorder %s40_s13, %s229_s0  ;;  %p235_p7 = scmp.lt.s32.totalorder %s229_s0, %s229_s0 }
  0x2e   :  { %p236_p8 = por %p235_p7, %p234_p6 }
  0x30   :  { %p237_p9 = pnand %p236_p8, %p230_p5 }
  0x32   :  { %240 = shalt.err (!%p237_p9)
}
  0x33   :  { %42 = dma.hbm_to_vmem [thread:$0]  %s387_s2, 64, %s40_s13, [#allocation7]  }
  0x34   :  { %s241_s27 = scalar_lea.hbm %s388_s3, 16 }
  0x35   :  { %p242_p10 = scmp.ne.s32.totalorder %s388_s3, %s241_s27  ;;  %p245_p11 = scmp.lt.u32.totalorder %s241_s27, %s388_s3 }
  0x37   :  { %p247_p12 = pnand %p245_p11, %p242_p10 }
  0x39   :  { %250 = shalt.err (!%p247_p12)
}
  0x3a   :  { %s251_s6 = scalar_lea.vmem %s50_s15, 16  ;;  %s255_s7 = scalar_lea.vmem %s50_s15, 32 }
  0x3b   :  { %p252_p13 = scmp.ne.s32.totalorder %s50_s15, %s251_s6  ;;  %p256_p0 = scmp.lt.s32.totalorder %s50_s15, %s50_s15 }
  0x3c   :  { %p257_p1 = scmp.lt.s32.totalorder %s255_s7, %s251_s6 }
  0x3e   :  { %p258_p2 = por %p257_p1, %p256_p0 }
  0x40   :  { %p259_p3 = pnand %p258_p2, %p252_p13 }
  0x42   :  { %262 = shalt.err (!%p259_p3)
}
  0x43   :  { %52 = dma.hbm_to_vmem [thread:$0]  %s388_s3, 16, %s50_s15, [#allocation10]  }
  0x44   :  { %285 = dma.done.wait [#allocation4], 128  }
  0x45   :  { %286 = vsyncadd [#allocation4], 4294967168 }
  0x46   :  { %287 = dma.done.wait [#allocation7], 96  }
  0x47   :  { %288 = vsyncadd [#allocation7], 4294967200 }
  0x48   :  { %289 = dma.done.wait [#allocation10], 16  }
  0x49   :  { %290 = vsyncadd [#allocation10], 4294967280  ;;  %vm69_vm0 = vcmask 7168   ;;  %v297_v0 = vmov 0.0   ;;  %vm73_vm1 = vcmask 64512   ;;  %v71_v1 = vld [vmem:[#allocation3] sm:$0xff]  ;;  %v87_v11 = vlaneseq }
  0x4a   :  { %70 = vst.msk [vmem:[#allocation2] sm:$0xff] %vm69_vm0, %v297_v0  ;;  %v74_v2 = vsel %vm73_vm1, %v71_v1, 0.0  ;;  %v298_v3 = vmov 0   ;;  %v84_v13 = vld [vmem:[#allocation9] sm:$0x1]  ;;  %s299_s3 = smov [#allocation11]  }
  0x4b   :  { %75 = vadd.xlane.f32.xlu0 %v74_v2  ;;  %174 = vset.pattern.permute.xlu1 %v298_v3  ;;  %v88_v12 = vshrl.u32 %v87_v11, 7  ;;  %v83_v15 = vld [vmem:[#allocation8] sm:$0xf]  ;;  %v85_v17 = vmul.f32 8.0, %v84_v13  ;;  %v144_v36 = vld [vmem:[#allocation6] sm:$0x3] }
  0x4c   :  { %173 = vset.pattern.permute.xlu0 %v298_v3  ;;  %s155_s9 = sshll.u32 %s299_s3, 4  ;;  %vm147_vm2 = vcmask 254976   ;;  %s156_s9 = int_to_ptr.vmem [resolvable:$true] %s155_s9 }
  0x4d   :  { %v89_v14 = vsub.s32 0, %v88_v12  ;;  %v114_v16 = vsub.s32 1, %v88_v12  ;;  %v127_v19 = vsub.s32 2, %v88_v12  ;;  %v140_v26 = vsub.s32 3, %v88_v12  ;;  %s263_s10 = scalar_lea.vmem %s156_s9, 32  ;;  %p268_p5 = scmp.lt.s32.totalorder %s156_s9, %s156_s9 }
  0x4e   :  { %p264_p4 = scmp.ne.s32.totalorder %s156_s9, %s263_s10  ;;  %p269_p6 = scmp.lt.s32.totalorder %s263_s10, %s263_s10 }
  0x4f   :  { %v102_v18 = vrot.slane %v83_v15, %v89_v14  ;;  %v115_v20 = vrot.slane %v83_v15, %v114_v16  ;;  %v90_v21 = vrot.slane %v85_v17, %v89_v14  ;;  %v128_v25 = vrot.slane %v83_v15, %v127_v19 }
  0x50   :  { %v141_v32 = vrot.slane %v83_v15, %v140_v26  ;;  %p270_p7 = por %p269_p6, %p268_p5 }
  0x51   :  { %v72_v4 = vld [vmem:[#allocation2] sm:$0xff] }
  0x52   :  { %p271_p8 = pnand %p270_p7, %p264_p4 }
  0xd8   :  { %v76_v5 = vpop.xlane.xlu0 %75 }
  0xd9   :  { %v77_v6 = vadd.f32 %v76_v5, %v72_v4 }
  0xdb   :  { %79 = vst.msk [vmem:[#allocation2] sm:$0xff] %vm69_vm0, %v77_v6 }
  0xe2   :  { %v106_v7 = vld [vmem:[#allocation2 + $0x1] ss:$4 sm:$0x3]  ;;  %v93_v8 = vld [vmem:[#allocation2] ss:$4 sm:$0x3] }
  0xe3   :  { %109 = vperm.xlu1 %174, %v106_v7   ;;  %96 = vperm.xlu0 %173, %v93_v8   ;;  %v119_v9 = vld [vmem:[#allocation2 + $0x2] ss:$4 sm:$0x3]  ;;  %v132_v10 = vld [vmem:[#allocation2 + $0x3] ss:$4 sm:$0x3] }
  0xe7   :  { %122 = vperm.xlu1 %174, %v119_v9  }
  0xeb   :  { %135 = vperm.xlu1 %174, %v132_v10  }
 0x162   :  { %v110_v22 = vpop.permute.xlu1 %109  ;;  %v97_v23 = vpop.permute.xlu0 %96 }
 0x163   :  { %v103_v24 = vmul.f32 %v102_v18, %v97_v23  ;;  %v116_v27 = vmul.f32 %v115_v20, %v110_v22 }
 0x165   :  { %v104_v28 = vadd.f32 %v103_v24, %v90_v21 }
 0x166   :  { %v123_v29 = vpop.permute.xlu1 %122 }
 0x167   :  { %v117_v30 = vadd.f32 %v116_v27, %v104_v28  ;;  %v129_v31 = vmul.f32 %v128_v25, %v123_v29 }
 0x169   :  { %v130_v34 = vadd.f32 %v129_v31, %v117_v30 }
 0x16a   :  { %v136_v33 = vpop.permute.xlu1 %135 }
 0x16b   :  { %v142_v35 = vmul.f32 %v141_v32, %v136_v33 }
 0x16d   :  { %v143_v37 = vadd.f32 %v142_v35, %v130_v34 }
 0x16f   :  { %v145_v38 = vsub.f32 %v143_v37, %v144_v36 }
 0x171   :  { %v146_v39 = vmul.f32 %v145_v38, %v145_v38 }
 0x173   :  { %148 = vst.msk [vmem:[#allocation11] sm:$0x3] %vm147_vm2, %v146_v39 }
 0x174   :  { %274 = shalt.err (!%p271_p8)
}
 0x175   :  { %s275_s12 = scalar_lea.hbm %s389_s4, 32 }
 0x176   :  { %p276_p9 = scmp.ne.s32.totalorder %s389_s4, %s275_s12  ;;  %p279_p10 = scmp.lt.u32.totalorder %s275_s12, %s389_s4 }
 0x178   :  { %p281_p11 = pnand %p279_p10, %p276_p9 }
 0x17a   :  { %284 = shalt.err (!%p281_p11)
}
 0x17b   :  { %158 = dma.vmem_to_hbm [thread:$0]  %s156_s9, 32, %s389_s4, [#allocation5]  }
 0x17c   :  { %291 = dma.done.wait [#allocation5], 32  }
 0x17d   :  { %292 = vsyncadd [#allocation5], 4294967264 }
 0x17e   :  { %162 = vsyncpa [#allocation4], 1 }
 0x17f   :  { %163 = vsyncpa [#allocation7], 1 }
 0x180   :  { %164 = vsyncpa [#allocation10], 1 }
 0x181   :  { %165 = vsyncpa [#allocation5], 1 }

</bundles_post_ra>
